<compile_context>
chip_gen: v7x
topology: tpu7x:2x2x1
jax: 0.10.0
libtpu: 0.0.40
codegen_flags: <defaults>
</compile_context>

<pallas_src>
import functools

import jax
import jax.numpy as jnp
from jax import lax
from jax.experimental import pallas as pl
from jax.experimental.pallas import tpu as pltpu


def _attn_agg_kernel(states_ref, w_ref, out_ref, m_sc, l_sc, acc_sc, *,
                     n_rows, tile_n):
    """One grid step over a (tile_n, H) slab of `states`.

    states_ref: (tile_n, H) native dtype in VMEM
    w_ref:      (1, H)      native dtype in VMEM (nn.Linear(H,1).weight, resident)
    out_ref:    (1, H)      output, written only at the last grid step
    m_sc/l_sc:  (1, 1) f32  running max / running softmax denominator
    acc_sc:     (1, H) f32  un-normalized weighted-sum accumulator
    """
    i = pl.program_id(0)
    last = pl.num_programs(0) - 1
    # Full f32 accuracy for f32 inputs; bf16 inputs take the native MXU path.
    prec = (lax.Precision.HIGHEST if states_ref.dtype == jnp.float32
            else lax.Precision.DEFAULT)

    @pl.when(i == 0)
    def _init():
        m_sc[...] = jnp.full_like(m_sc, -jnp.inf)
        l_sc[...] = jnp.zeros_like(l_sc)
        acc_sc[...] = jnp.zeros_like(acc_sc)

    def _update(s, lane_valid):
        # s: (tile_n, H) native dtype; lane_valid: (1, tile_n) bool or None.
        # Linear(H -> 1) row scores on the MXU: (1,H) . (tile_n,H)^T -> (1, tile_n).
        scores = lax.dot_general(
            w_ref[...], s,
            dimension_numbers=(((1,), (1,)), ((), ())),
            preferred_element_type=jnp.float32,
            precision=prec)                                     # (1, tile_n) f32
        if lane_valid is not None:
            scores = jnp.where(lane_valid, scores, -jnp.inf)

        # Online softmax in lane-major layout; accumulate un-normalized sums.
        m_prev = m_sc[...]                                      # (1, 1)
        m_new = jnp.maximum(m_prev, jnp.max(scores, axis=-1, keepdims=True))
        alpha = jnp.exp(m_prev - m_new)                         # (1, 1)
        e = jnp.exp(scores - m_new)                             # (1, tile_n)

        l_sc[...] = alpha * l_sc[...] + jnp.sum(e, axis=-1, keepdims=True)
        # Weighted partial sum on the MXU: (1, tile_n) x (tile_n, H) -> (1, H).
        acc_sc[...] = alpha * acc_sc[...] + lax.dot_general(
            e.astype(s.dtype), s,
            dimension_numbers=(((1,), (0,)), ((), ())),
            preferred_element_type=jnp.float32,
            precision=prec)
        m_sc[...] = m_new

    n_tail = n_rows % tile_n
    if n_tail == 0:
        # No partial tile anywhere: single unmasked path for every grid step.
        _update(states_ref[...], None)
    else:
        @pl.when(i < last)
        def _steady():                       # hot loop: no iota/compare/select
            _update(states_ref[...], None)

        @pl.when(i == last)
        def _tail():
            s = states_ref[...]
            # Zero the garbage rows of the partial last block (Pallas does not
            # zero-fill OOB block padding; 0 * NaN would poison the acc matmul).
            row_valid = lax.broadcasted_iota(jnp.int32, (tile_n, 1), 0) < n_tail
            s = jnp.where(row_valid, s, jnp.zeros_like(s))
            lane_valid = lax.broadcasted_iota(jnp.int32, (1, tile_n), 1) < n_tail
            _update(s, lane_valid)

    @pl.when(i == last)
    def _finalize():
        # One exact divide on the tiny (1, H) result; negligible cost.
        out_ref[...] = (acc_sc[...] / l_sc[...]).astype(out_ref.dtype)


def _vmem_budget_bytes():
    """Per-generation (states-buffer byte budget, scoped-VMEM limit)."""
    try:
        info = pltpu.get_tpu_info()
        cap = getattr(info, "vmem_capacity_bytes", 64 * 1024 * 1024)
    except Exception:                        # no info available: assume smallest (v7x)
        cap = 64 * 1024 * 1024
    if cap <= 64 * 1024 * 1024:
        # v7x: 64 MiB VMEM per TensorCore -> 2 x ~20 MiB states buffers + scratch.
        return 20 * 1024 * 1024, 48 * 1024 * 1024
    # v5e / v6e: 128 MiB physical VMEM (v5e's 16 MiB default scoped limit is
    # overridden explicitly via vmem_limit_bytes below).
    return 24 * 1024 * 1024, 64 * 1024 * 1024


def _choose_tile_n(n, h, itemsize, per_buf_budget):
    """Largest N-tile that double-buffers inside the per-generation byte budget."""
    pack = max(8, 32 // max(1, itemsize))    # sublane pack: 8 f32, 16 bf16, 32 int8
    max_rows = max(pack, per_buf_budget // max(1, h * itemsize))
    tile = max(pack, (max_rows // pack) * pack)
    if tile >= n:
        return n                             # single full-extent block (always legal)
    return tile


def attn_aggregator(states, weight, bias=None, *, tile_n=None):
    """states: (N, H); weight: (1, H); bias: (1,) unused (softmax shift-invariant).

    Returns the pooled (H,) vector in states.dtype.
    """
    del bias  # softmax(scores + b) == softmax(scores) for a scalar bias
    n, h = states.shape
    if n == 0:
        # Degenerate empty set: softmax over zero elements is undefined upstream.
        return jnp.zeros((h,), states.dtype)
    w2 = weight.reshape(1, h).astype(states.dtype)

    per_buf_budget, vmem_limit = _vmem_budget_bytes()
    if tile_n is None:
        tile_n = _choose_tile_n(n, h, states.dtype.itemsize, per_buf_budget)
    grid = (pl.cdiv(n, tile_n),)

    kernel = functools.partial(_attn_agg_kernel, n_rows=n, tile_n=tile_n)

    out = pl.pallas_call(
        kernel,
        out_shape=jax.ShapeDtypeStruct((1, h), states.dtype),
        grid_spec=pltpu.PrefetchScalarGridSpec(
            num_scalar_prefetch=0,
            grid=grid,
            in_specs=[
                pl.BlockSpec((tile_n, h), lambda i: (i, 0)),  # states, tiled over N
                pl.BlockSpec((1, h), lambda i: (0, 0)),       # weight, resident
            ],
            out_specs=pl.BlockSpec((1, h), lambda i: (0, 0)),
            scratch_shapes=[
                pltpu.VMEM((1, 1), jnp.float32),   # running max m
                pltpu.VMEM((1, 1), jnp.float32),   # running denom l
                pltpu.VMEM((1, h), jnp.float32),   # un-normalized accumulator
            ],
        ),
        compiler_params=pltpu.CompilerParams(
            dimension_semantics=("arbitrary",),    # softmax reduction over N
            vmem_limit_bytes=vmem_limit,
        ),
    )(states, w2)
    return out[0]


def attn_aggregator_ref(states, weight, bias):
    """Pure-JAX reference mirroring the PyTorch forward exactly (incl. bias)."""
    s = states.astype(jnp.float32)
    w = weight.astype(jnp.float32)
    b = bias.astype(jnp.float32)
    scores = (s @ w.reshape(-1, 1) + b)[:, 0]            # (N,)
    scores = jax.nn.softmax(scores, axis=-1)             # softmax over N
    return (s * scores[:, None]).sum(axis=0)             # (H,) f32


if __name__ == "__main__":
    key = jax.random.PRNGKey(0)

    def make_inputs(k, n, h, dtype):
        k_s, k_w, k_b = jax.random.split(k, 3)
        bound = 1.0 / jnp.sqrt(jnp.float32(h))
        states = jax.random.normal(k_s, (n, h), dtype=jnp.float32).astype(dtype)
        weight = jax.random.uniform(k_w, (1, h), minval=-bound, maxval=bound,
                                    dtype=jnp.float32).astype(dtype)
        bias = jax.random.uniform(k_b, (1,), minval=-bound, maxval=bound,
                                  dtype=jnp.float32).astype(dtype)
        return states, weight, bias

    k0, k1, k2 = jax.random.split(key, 3)

    # 1) Small shape consistent with the module: N = 8 states, hidden = 32 (f32).
    N, H = 8, 32
    states, weight, bias = make_inputs(k0, N, H, jnp.float32)
    out = jax.block_until_ready(attn_aggregator(states, weight, bias))
    ref = attn_aggregator_ref(states, weight, bias)
    assert out.shape == (H,)
    assert jnp.allclose(out.astype(jnp.float32), ref, atol=2e-5, rtol=2e-5), (out, ref)

    # 2) Exercise the tiled online-softmax path with a masked partial last tile
    #    (N = 20, tile_n = 8 -> 3 grid steps: 2 unmasked fast-path + 1 tail step).
    N2 = 20
    states2, weight2, bias2 = make_inputs(k1, N2, H, jnp.float32)
    out2 = jax.block_until_ready(attn_aggregator(states2, weight2, bias2, tile_n=8))
    ref2 = attn_aggregator_ref(states2, weight2, bias2)
    assert jnp.allclose(out2.astype(jnp.float32), ref2, atol=2e-5, rtol=2e-5), (out2, ref2)

    # 3) Native-dtype (bf16) path: bf16 tiles feed the MXU directly, output is bf16.
    states3, weight3, bias3 = make_inputs(k2, N, H, jnp.bfloat16)
    out3 = jax.block_until_ready(attn_aggregator(states3, weight3, bias3))
    ref3 = attn_aggregator_ref(states3, weight3, bias3)
    assert out3.dtype == jnp.bfloat16
    assert jnp.allclose(out3.astype(jnp.float32), ref3, atol=2e-2, rtol=2e-2), (out3, ref3)

    print("KERNEL_OK")
</pallas_src>

<mosaic_0001>
module attributes {stable_mosaic.version = 11 : i64} {
  func.func @_attn_agg_kernel(%arg0: i32, %arg1: memref<8x32xf32, #tpu.memory_space<vmem>>, %arg2: memref<1x32xf32, #tpu.memory_space<vmem>>, %arg3: memref<1x32xf32, #tpu.memory_space<vmem>>, %arg4: memref<1x1xf32, #tpu.memory_space<vmem>>, %arg5: memref<1x1xf32, #tpu.memory_space<vmem>>, %arg6: memref<1x32xf32, #tpu.memory_space<vmem>>) attributes {dimension_semantics = [#tpu.dimension_semantics<arbitrary>], iteration_bounds = array<i64: 1>, scalar_prefetch = 0 : i64, scratch_operands = 3 : i64, tpu.core_type = #tpu.core_type<tc>, window_params = [{transform_indices = @transform_0, window_bounds = array<i64: 8, 32>}, {pipeline_mode = #tpu.pipeline_mode<synchronous>, transform_indices = @transform_1, window_bounds = array<i64: 1, 32>}, {pipeline_mode = #tpu.pipeline_mode<synchronous>, transform_indices = @transform_2, window_bounds = array<i64: 1, 32>}]} {
    %c0_i32 = arith.constant 0 : i32
    %0 = arith.cmpi eq, %arg0, %c0_i32 : i32
    %1 = arith.extui %0 : i1 to i32
    %c0_i32_0 = arith.constant 0 : i32
    %2 = arith.cmpi ne, %1, %c0_i32_0 : i32
    scf.if %2 {
      %cst_21 = arith.constant 0xFF800000 : f32
      %31 = vector.broadcast %cst_21 : f32 to vector<1x1xf32>
      %c0_22 = arith.constant 0 : index
      %c0_23 = arith.constant 0 : index
      %32 = vector.load %arg4[%c0_22, %c0_23] : memref<1x1xf32, #tpu.memory_space<vmem>>, vector<1x1xf32>
      tpu.vector_store %arg4[%c0_22, %c0_23], %31 {strides = array<i32>} : memref<1x1xf32, #tpu.memory_space<vmem>>, vector<1x1xf32>,
      %cst_24 = arith.constant 0.000000e+00 : f32
      %33 = vector.broadcast %cst_24 : f32 to vector<1x1xf32>
      %c0_25 = arith.constant 0 : index
      %c0_26 = arith.constant 0 : index
      %34 = vector.load %arg5[%c0_25, %c0_26] : memref<1x1xf32, #tpu.memory_space<vmem>>, vector<1x1xf32>
      tpu.vector_store %arg5[%c0_25, %c0_26], %33 {strides = array<i32>} : memref<1x1xf32, #tpu.memory_space<vmem>>, vector<1x1xf32>,
      %cst_27 = arith.constant 0.000000e+00 : f32
      %35 = vector.broadcast %cst_27 : f32 to vector<1x32xf32>
      %c0_28 = arith.constant 0 : index
      %c0_29 = arith.constant 0 : index
      %36 = vector.load %arg6[%c0_28, %c0_29] : memref<1x32xf32, #tpu.memory_space<vmem>>, vector<1x32xf32>
      tpu.vector_store %arg6[%c0_28, %c0_29], %35 {strides = array<i32>} : memref<1x32xf32, #tpu.memory_space<vmem>>, vector<1x32xf32>,
    } else {
    }
    %c0 = arith.constant 0 : index
    %c0_1 = arith.constant 0 : index
    %3 = vector.load %arg1[%c0, %c0_1] : memref<8x32xf32, #tpu.memory_space<vmem>>, vector<8x32xf32>
    %c0_2 = arith.constant 0 : index
    %c0_3 = arith.constant 0 : index
    %4 = vector.load %arg2[%c0_2, %c0_3] : memref<1x32xf32, #tpu.memory_space<vmem>>, vector<1x32xf32>
    %cst = arith.constant dense<0.000000e+00> : vector<1x8xf32>
    %5 = tpu.matmul %4, %3, %cst {dimension_numbers = #tpu.dot_dimension_numbers<[1], [1], [0], [0], [0, 0, 1, 0], [], []>, precision = #tpu.contract_precision<fp32>} : vector<1x32xf32>, vector<8x32xf32>, vector<1x8xf32> -> vector<1x8xf32>
    %c0_4 = arith.constant 0 : index
    %c0_5 = arith.constant 0 : index
    %6 = vector.load %arg4[%c0_4, %c0_5] : memref<1x1xf32, #tpu.memory_space<vmem>>, vector<1x1xf32>
    %cst_6 = arith.constant dense<0xFF800000> : vector<1xf32>
    %7 = vector.multi_reduction <maximumf>, %5, %cst_6 [1] : vector<1x8xf32> to vector<1xf32>
    %8 = vector.shape_cast %7 : vector<1xf32> to vector<1x1xf32>
    %9 = arith.maximumf %6, %8 : vector<1x1xf32>
    %10 = arith.subf %6, %9 : vector<1x1xf32>
    %11 = math.exp %10 : vector<1x1xf32>
    %12 = vector.broadcast %9 : vector<1x1xf32> to vector<1x8xf32>
    %13 = arith.subf %5, %12 : vector<1x8xf32>
    %14 = math.exp %13 : vector<1x8xf32>
    %c0_7 = arith.constant 0 : index
    %c0_8 = arith.constant 0 : index
    %15 = vector.load %arg5[%c0_7, %c0_8] : memref<1x1xf32, #tpu.memory_space<vmem>>, vector<1x1xf32>
    %16 = arith.mulf %11, %15 : vector<1x1xf32>
    %cst_9 = arith.constant dense<0.000000e+00> : vector<1xf32>
    %17 = vector.multi_reduction <add>, %14, %cst_9 [1] : vector<1x8xf32> to vector<1xf32>
    %18 = vector.shape_cast %17 : vector<1xf32> to vector<1x1xf32>
    %19 = arith.addf %16, %18 : vector<1x1xf32>
    %c0_10 = arith.constant 0 : index
    %c0_11 = arith.constant 0 : index
    %20 = vector.load %arg5[%c0_10, %c0_11] : memref<1x1xf32, #tpu.memory_space<vmem>>, vector<1x1xf32>
    tpu.vector_store %arg5[%c0_10, %c0_11], %19 {strides = array<i32>} : memref<1x1xf32, #tpu.memory_space<vmem>>, vector<1x1xf32>,
    %c0_12 = arith.constant 0 : index
    %c0_13 = arith.constant 0 : index
    %21 = vector.load %arg6[%c0_12, %c0_13] : memref<1x32xf32, #tpu.memory_space<vmem>>, vector<1x32xf32>
    %22 = vector.broadcast %11 : vector<1x1xf32> to vector<1x32xf32>
    %23 = arith.mulf %22, %21 : vector<1x32xf32>
    %cst_14 = arith.constant dense<0.000000e+00> : vector<1x32xf32>
    %24 = tpu.matmul %14, %3, %cst_14 {dimension_numbers = #tpu.dot_dimension_numbers<[1], [0], [0], [1], [0, 0, 1, 1], [], []>, precision = #tpu.contract_precision<fp32>} : vector<1x8xf32>, vector<8x32xf32>, vector<1x32xf32> -> vector<1x32xf32>
    %25 = arith.addf %23, %24 : vector<1x32xf32>
    %c0_15 = arith.constant 0 : index
    %c0_16 = arith.constant 0 : index
    %26 = vector.load %arg6[%c0_15, %c0_16] : memref<1x32xf32, #tpu.memory_space<vmem>>, vector<1x32xf32>
    tpu.vector_store %arg6[%c0_15, %c0_16], %25 {strides = array<i32>} : memref<1x32xf32, #tpu.memory_space<vmem>>, vector<1x32xf32>,
    %c0_17 = arith.constant 0 : index
    %c0_18 = arith.constant 0 : index
    %27 = vector.load %arg4[%c0_17, %c0_18] : memref<1x1xf32, #tpu.memory_space<vmem>>, vector<1x1xf32>
    tpu.vector_store %arg4[%c0_17, %c0_18], %9 {strides = array<i32>} : memref<1x1xf32, #tpu.memory_space<vmem>>, vector<1x1xf32>,
    %c0_i32_19 = arith.constant 0 : i32
    %28 = arith.cmpi eq, %arg0, %c0_i32_19 : i32
    %29 = arith.extui %28 : i1 to i32
    %c0_i32_20 = arith.constant 0 : i32
    %30 = arith.cmpi ne, %29, %c0_i32_20 : i32
    scf.if %30 {
      %c0_21 = arith.constant 0 : index
      %c0_22 = arith.constant 0 : index
      %31 = vector.load %arg6[%c0_21, %c0_22] : memref<1x32xf32, #tpu.memory_space<vmem>>, vector<1x32xf32>
      %c0_23 = arith.constant 0 : index
      %c0_24 = arith.constant 0 : index
      %32 = vector.load %arg5[%c0_23, %c0_24] : memref<1x1xf32, #tpu.memory_space<vmem>>, vector<1x1xf32>
      %33 = vector.broadcast %32 : vector<1x1xf32> to vector<1x32xf32>
      %34 = arith.divf %31, %33 : vector<1x32xf32>
      %c0_25 = arith.constant 0 : index
      %c0_26 = arith.constant 0 : index
      %35 = vector.load %arg3[%c0_25, %c0_26] : memref<1x32xf32, #tpu.memory_space<vmem>>, vector<1x32xf32>
      tpu.vector_store %arg3[%c0_25, %c0_26], %34 {strides = array<i32>} : memref<1x32xf32, #tpu.memory_space<vmem>>, vector<1x32xf32>,
    } else {
    }
    return
  }
  func.func @transform_0(%arg0: i32) -> (i32, i32) {
    %c0_i32 = arith.constant 0 : i32
    %c0_i32_0 = arith.constant 0 : i32
    return %arg0, %c0_i32 : i32, i32
  }
  func.func @transform_1(%arg0: i32) -> (i32, i32) {
    %c0_i32 = arith.constant 0 : i32
    %c0_i32_0 = arith.constant 0 : i32
    %c0_i32_1 = arith.constant 0 : i32
    return %c0_i32, %c0_i32_0 : i32, i32
  }
  func.func @transform_2(%arg0: i32) -> (i32, i32) {
    %c0_i32 = arith.constant 0 : i32
    %c0_i32_0 = arith.constant 0 : i32
    %c0_i32_1 = arith.constant 0 : i32
    return %c0_i32, %c0_i32_0 : i32, i32
  }
}

</mosaic_0001>

<bundles_post_ra>
// kernel: tpu_custom_call.1
= control target key start
LH: loop header
LB: loop body
LE: loop exit
PB: predicated region body
PF: predicated region fallthrough
CT: control target
= control target key end

     0   :  { %7 = vsyncpa [#allocation6], 0  ;;  %s1275_s0 = inlined_call_operand.hbm [shape: f32[8,32], index: 0, kind: input, shape index: {}]   ;;  %s1276_s1 = inlined_call_operand.vmem [shape: f32[1,32], index: 1, kind: input, shape index: {}]   ;;  %s1277_s2 = inlined_call_operand.hbm [shape: f32[1,32], index: 2, kind: output, shape index: {}]  }
   0x1   :  { %8 = vsyncpa [#allocation7], 0  ;;  %s1170_s9 = smov [#allocation5]   ;;  %s1122_s13 = scalar_lea.hbm %s1275_s0, 128 }
   0x2   :  { %s15_s10 = sshll.u32 %s1170_s9, 4  ;;  %p1123_p0 = scmp.ne.s32.totalorder %s1275_s0, %s1122_s13  ;;  %s16_s10 = int_to_ptr.vmem [resolvable:$true] %s15_s10 }
   0x3   :  { %p1126_p1 = scmp.lt.u32.totalorder %s1122_s13, %s1275_s0 }
   0x5   :  { %p1128_p2 = pnand %p1126_p1, %p1123_p0 }
   0x7   :  { %1131 = shalt.err (!%p1128_p2)
}
   0x8   :  { %s1132_s18 = scalar_lea.vmem %s16_s10, 128  ;;  %p1137_p4 = scmp.lt.s32.totalorder %s16_s10, %s16_s10 }
   0x9   :  { %p1133_p3 = scmp.ne.s32.totalorder %s16_s10, %s1132_s18  ;;  %p1138_p5 = scmp.lt.s32.totalorder %s1132_s18, %s1132_s18 }
   0xb   :  { %p1139_p6 = por %p1138_p5, %p1137_p4 }
   0xd   :  { %p1140_p7 = pnand %p1139_p6, %p1133_p3 }
   0xf   :  { %1143 = shalt.err (!%p1140_p7)
}
  0x10   :  { %18 = dma.hbm_to_vmem [thread:$0]  %s1275_s0, 128, %s16_s10, [#allocation6]  }
  0x11   :  { %1166 = dma.done.wait [#allocation6], 128  }
  0x12   :  { %1167 = vsyncadd [#allocation6], 4294967168  ;;  %v1171_v0 = vmov 0.0   ;;  %vm1172_vm0 = vmmov 0   ;;  %vm35_vm1 = vcmask 261120   ;;  %v1209_v1 = vld [vmem:[#allocation5] sm:$0xff]  ;;  %v502_v25 = vlaneseq }
  0x13   :  { %1038 = vmatprep.subr.mxu0 %v1171_v0  ;;  %1040 = vmatprep.mubr.msk.f32.mxu0 %vm1172_vm0, %v1171_v0  ;;  %v34_v2 = vld [vmem:[%s1276_s1] sm:$0x1]  ;;  %v40_v3 = vsel %vm35_vm1, %v1209_v1, 0  ;;  %vm28_vm2 = vcmask 0   ;;  %v1173_v15 = vmov -inf   ;;  %vm489_vm3 = vcmask 57344  }
  0x14   :  { %1068 = vmatprep.subr.mxu1 %v1171_v0  ;;  %1070 = vmatprep.mubr.msk.f32.mxu1 %vm1172_vm0, %v1171_v0  ;;  %v37_v4 = vsel %vm35_vm1, %v34_v2, 0  ;;  %v43_v5 = vand.u32 4294901760, %v40_v3  ;;  %29 = vst.msk [vmem:[#allocation2] sm:$0x1] %vm28_vm2, %v1173_v15  ;;  %30 = vst.msk [vmem:[#allocation3] sm:$0x1] %vm28_vm2, %v1171_v0 }
  0x15   :  { %v108_v6 = vand.u32 4294901760, %v37_v4  ;;  %v1174_v19 = vmov 0   ;;  %v533_v24 = vand.u32 4294901760, %v1209_v1  ;;  %v503_v26 = vshrl.u32 %v502_v25, 7  ;;  %s1175_s0 = smov [#allocation8]  }
  0x16   :  { %1039 = vmatpush3.xpose.msra.mxu0 %v43_v5  ;;  %v120_v7 = vsub.f32 %v40_v3, %v43_v5  ;;  %1114 = vset.pattern.permute.xlu0 %v1174_v19  ;;  %vm528_vm4 = vcmask 64512   ;;  %vm31_vm5 = vcmask 253952   ;;  %s1005_s1 = sshll.u32 %s1175_s0, 4  ;;  %s1006_s1 = int_to_ptr.vmem [resolvable:$true] %s1005_s1 }
  0x17   :  { %v109_v8 = vsub.f32 %v37_v4, %v108_v6  ;;  %1043 = vmatprep.subr.mxu0 %v1171_v0  ;;  %1115 = vset.pattern.permute.xlu1 %v1174_v19  ;;  %v1237_v27 = vsub.s32 0, %v503_v26  ;;  %v610_v32 = vsub.f32 %v1209_v1, %v533_v24  ;;  %32 = vst.msk [vmem:[#allocation4] sm:$0x1] %vm31_vm5, %v1171_v0  ;;  %s1144_s23 = scalar_lea.vmem %s1006_s1, 16  ;;  %s1148_s24 = scalar_lea.vmem %s1006_s1, 32 }
  0x18   :  { %v121_v10 = vand.u32 4294901760, %v120_v7  ;;  %1069 = vmatpush3.msra.mxu1 %v533_v24  ;;  %p1145_p8 = scmp.ne.s32.totalorder %s1006_s1, %s1144_s23  ;;  %p1149_p9 = scmp.lt.s32.totalorder %s1006_s1, %s1006_s1 }
  0x19   :  { %v110_v9 = vand.u32 4294901760, %v109_v8  ;;  %1073 = vmatprep.subr.mxu1 %v1171_v0  ;;  %v611_v36 = vand.u32 4294901760, %v610_v32  ;;  %p1150_p10 = scmp.lt.s32.totalorder %s1148_s24, %s1144_s23 }
  0x1a   :  { %v122_v12 = vsub.f32 %v120_v7, %v121_v10 }
  0x1b   :  { %v111_v11 = vsub.f32 %v109_v8, %v110_v9  ;;  %v488_v20 = vld [vmem:[#allocation2] sm:$0x1]  ;;  %v612_v40 = vsub.f32 %v610_v32, %v611_v36  ;;  %v509_v46 = vld [vmem:[#allocation3] sm:$0x1]  ;;  %p1151_p11 = por %p1150_p10, %p1149_p9 }
  0x1c   :  { %v123_v14 = vand.u32 4294901760, %v122_v12 }
  0x1d   :  { %v112_v13 = vand.u32 4294901760, %v111_v11  ;;  %v613_v43 = vand.u32 4294901760, %v612_v40  ;;  %p1152_p12 = pnand %p1151_p11, %p1145_p8 }
  0x1e   :  { %v517_v3 = vld [vmem:[#allocation4] sm:$0x1] }
  0x1f   :  { %1041 = vmatmul.mubr.f32.vlgmr.msra.gmra.mrb[0].mxu0 %v112_v13 }
  0x20   :  { %1044 = vmatpush3.xpose.msra.mxu0 %v123_v14  ;;  %1045 = vmatprep.mubr.msk.f32.mxu0 %vm1172_vm0, %v1171_v0 }
  0x21   :  { %1048 = vmatprep.subr.mxu0 %v1171_v0 }
  0x27   :  { %1046 = vmatmul.mubr.f32.vlgmr.msra.gmra.mrb[0].mxu0 %v108_v6 }
  0x28   :  { %1049 = vmatpush3.xpose.msra.mxu0 %v120_v7  ;;  %1050 = vmatprep.mubr.msk.f32.mxu0 %vm1172_vm0, %v1171_v0 }
  0x29   :  { %1053 = vmatprep.subr.mxu0 %v1171_v0 }
  0x2f   :  { %1051 = vmatmul.mubr.f32.vlgmr.msra.gmra.mrb[0].mxu0 %v109_v8 }
  0x30   :  { %1054 = vmatpush3.xpose.msra.mxu0 %v43_v5  ;;  %1055 = vmatprep.mubr.msk.f32.mxu0 %vm1172_vm0, %v1171_v0 }
  0x31   :  { %1058 = vmatprep.subr.mxu0 %v1171_v0 }
  0x37   :  { %1056 = vmatmul.mubr.f32.vlgmr.msra.gmra.mrb[0].mxu0 %v110_v9 }
  0x38   :  { %1059 = vmatpush3.xpose.msra.mxu0 %v121_v10  ;;  %1060 = vmatprep.mubr.msk.f32.mxu0 %vm1172_vm0, %v1171_v0 }
  0x39   :  { %1063 = vmatprep.subr.mxu0 %v1171_v0 }
  0x3f   :  { %1061 = vmatmul.mubr.f32.vlgmr.msra.gmra.mrb[0].mxu0 %v108_v6 }
  0x40   :  { %1064 = vmatpush3.xpose.msra.mxu0 %v43_v5  ;;  %1065 = vmatprep.mubr.msk.f32.mxu0 %vm1172_vm0, %v1171_v0 }
  0x47   :  { %1066 = vmatmul.mubr.f32.vlgmr.msra.gmra.mrb[0].mxu0 %v108_v6 }
 0x11a   :  { %v484_v16 = vpop.f32.mrb[0].mxu0 }
 0x11b   :  { %v1067_v17 = vpop.f32.mrb[1].mxu0  ;;  %v490_v18 = vsel %vm489_vm3, %v484_v16, -inf }
 0x11c   :  { %491 = vmax.xlane.f32.xlu0 %v490_v18 }
 0x1a9   :  { %v492_v21 = vpop.xlane.xlu0 %491 }
 0x1aa   :  { %v493_v22 = vmax.f32 %v488_v20, %v492_v21 }
 0x1ac   :  { %v494_v23 = vsub.f32 %v488_v20, %v493_v22  ;;  %981 = vst.msk [vmem:[#allocation2] sm:$0x1] %vm28_vm2, %v493_v22  ;;  %499 = vperm.xlu0 %1114, %v493_v22  }
 0x1ae   :  { %v495_v38 = vmul.f32 1.442695, %v494_v23 }
 0x22b   :  { %v500_v28 = vpop.permute.xlu0 %499 }
 0x22c   :  { %v505_v29 = vrot.slane %v500_v28, %v1237_v27 }
 0x22e   :  { %v506_v30 = vsub.f32 %v484_v16, %v505_v29 }
 0x230   :  { %v507_v31 = vmul.f32 1.442695, %v506_v30 }
 0x232   :  { %1116 = vpow2.f32 %v507_v31 }
 0x233   :  { %1118 = vpow2.f32 %v495_v38 }
 0x23c   :  { %v1117_v33 = vpop.eup %1116 }
 0x23d   :  { %v511_v34 = vsel %vm489_vm3, %v1117_v33, 0.0  ;;  %v530_v35 = vsel %vm528_vm4, %v1117_v33, 0  ;;  %v1119_v45 = vpop.eup %1118 }
 0x23e   :  { %512 = vadd.xlane.f32.xlu1 %v511_v34  ;;  %v598_v37 = vand.u32 4294901760, %v530_v35  ;;  %v510_v47 = vmul.f32 %v1119_v45, %v509_v46 }
 0x240   :  { %v599_v39 = vsub.f32 %v530_v35, %v598_v37 }
 0x242   :  { %v600_v41 = vand.u32 4294901760, %v599_v39 }
 0x244   :  { %v601_v42 = vsub.f32 %v599_v39, %v600_v41 }
 0x246   :  { %v602_v44 = vand.u32 4294901760, %v601_v42 }
 0x248   :  { %1071 = vmatmul.mubr.f32.vlgmr.msra.gmra.mrb[0].mxu1 %v602_v44 }
 0x249   :  { %1074 = vmatpush3.msra.mxu1 %v613_v43  ;;  %1075 = vmatprep.mubr.msk.f32.mxu1 %vm1172_vm0, %v1171_v0 }
 0x24a   :  { %1078 = vmatprep.subr.mxu1 %v1171_v0 }
 0x24c   :  { %1076 = vmatmul.mubr.f32.vlgmr.msra.gmra.mrb[2].mxu1 %v598_v37 }
 0x24d   :  { %1079 = vmatpush3.msra.mxu1 %v610_v32  ;;  %1080 = vmatprep.mubr.msk.f32.mxu1 %vm1172_vm0, %v1171_v0 }
 0x24e   :  { %1083 = vmatprep.subr.mxu1 %v1171_v0 }
 0x24f   :  { %520 = vperm.xlu1 %1115, %v1119_v45  }
 0x250   :  { %1081 = vmatmul.mubr.f32.vlgmr.msra.gmra.mrb[4].mxu1 %v599_v39 }
 0x251   :  { %1084 = vmatpush3.msra.mxu1 %v533_v24  ;;  %1085 = vmatprep.mubr.msk.f32.mxu1 %vm1172_vm0, %v1171_v0 }
 0x252   :  { %1088 = vmatprep.subr.mxu1 %v1171_v0 }
 0x254   :  { %1086 = vmatmul.mubr.f32.vlgmr.msra.gmra.mrb[6].mxu1 %v600_v41 }
 0x255   :  { %1089 = vmatpush3.msra.mxu1 %v611_v36  ;;  %1090 = vmatprep.mubr.msk.f32.mxu1 %vm1172_vm0, %v1171_v0 }
 0x256   :  { %1093 = vmatprep.subr.mxu1 %v1171_v0 }
 0x258   :  { %1091 = vmatmul.mubr.f32.vlgmr.msra.gmra.mrb[8].mxu1 %v598_v37 }
 0x259   :  { %1094 = vmatpush3.msra.mxu1 %v533_v24  ;;  %1095 = vmatprep.mubr.msk.f32.mxu1 %vm1172_vm0, %v1171_v0 }
 0x25c   :  { %1096 = vmatmul.mubr.f32.vlgmr.msra.gmra.mrb[10].mxu1 %v598_v37 }
 0x2cb   :  { %v513_v48 = vpop.xlane.xlu1 %512 }
 0x2cc   :  { %v514_v49 = vadd.f32 %v513_v48, %v510_v47 }
 0x2ce   :  { %516 = vst.msk [vmem:[#allocation3] sm:$0x1] %vm28_vm2, %v514_v49 }
 0x2cf   :  { %v521_v62 = vpop.permute.xlu1 %520 }
 0x2d0   :  { %v526_v0 = vrot.slane %v521_v62, %v1237_v27 }
 0x2d2   :  { %v527_v5 = vmul.f32 %v526_v0, %v517_v3 }
 0x2d5   :  { %v986_v50 = vld [vmem:[#allocation3] sm:$0x1] }
 0x2d6   :  { %989 = vperm.xlu1 %1115, %v986_v50  }
 0x31b   :  { %v604_v51 = vpop.f32.mrb[0].mxu1 }
 0x31c   :  { %v1072_v52 = vpop.f32.mrb[1].mxu1 }
 0x31f   :  { %v680_v53 = vpop.f32.mrb[2].mxu1 }
 0x320   :  { %v681_v54 = vadd.f32 %v680_v53, %v604_v51  ;;  %v1077_v55 = vpop.f32.mrb[3].mxu1 }
 0x323   :  { %v754_v56 = vpop.f32.mrb[4].mxu1 }
 0x324   :  { %v755_v57 = vadd.f32 %v754_v56, %v681_v54  ;;  %v1082_v58 = vpop.f32.mrb[5].mxu1 }
 0x327   :  { %v828_v59 = vpop.f32.mrb[6].mxu1 }
 0x328   :  { %v829_v60 = vadd.f32 %v828_v59, %v755_v57  ;;  %v1087_v61 = vpop.f32.mrb[7].mxu1 }
 0x32b   :  { %v902_v63 = vpop.f32.mrb[8].mxu1 }
 0x32c   :  { %v903_v1 = vadd.f32 %v902_v63, %v829_v60  ;;  %v1092_v2 = vpop.f32.mrb[9].mxu1 }
 0x32f   :  { %v974_v4 = vpop.f32.mrb[10].mxu1 }
 0x330   :  { %v975_v6 = vadd.f32 %v974_v4, %v903_v1  ;;  %v1097_v7 = vpop.f32.mrb[11].mxu1 }
 0x332   :  { %v978_v8 = vadd.f32 %v975_v6, %v527_v5 }
 0x334   :  { %980 = vst.msk [vmem:[#allocation4] sm:$0x1] %vm31_vm5, %v978_v8 }
 0x33b   :  { %v985_v12 = vld [vmem:[#allocation4] sm:$0x1] }
 0x355   :  { %v990_v9 = vpop.permute.xlu1 %989 }
 0x356   :  { %v995_v10 = vrot.slane %v990_v9, %v1237_v27 }
 0x358   :  { %1120 = vrcp.f32 %v995_v10 }
 0x362   :  { %v1121_v11 = vpop.eup %1120 }
 0x363   :  { %v997_v13 = vmul.f32 %v1121_v11, %v985_v12 }
 0x365   :  { %998 = vst.msk [vmem:[#allocation8] sm:$0x1] %vm31_vm5, %v997_v13 }
 0x366   :  { %1155 = shalt.err (!%p1152_p12)
}
 0x367   :  { %s1156_s27 = scalar_lea.hbm %s1277_s2, 16 }
 0x368   :  { %p1157_p13 = scmp.ne.s32.totalorder %s1277_s2, %s1156_s27  ;;  %p1160_p0 = scmp.lt.u32.totalorder %s1156_s27, %s1277_s2 }
 0x36a   :  { %p1162_p1 = pnand %p1160_p0, %p1157_p13 }
 0x36c   :  { %1165 = shalt.err (!%p1162_p1)
}
 0x36d   :  { %1008 = dma.vmem_to_hbm [thread:$0]  %s1006_s1, 16, %s1277_s2, [#allocation7]  }
 0x36e   :  { %1168 = dma.done.wait [#allocation7], 16  }
 0x36f   :  { %1169 = vsyncadd [#allocation7], 4294967280 }
 0x370   :  { %1012 = vsyncpa [#allocation6], 1 }
 0x371   :  { %1013 = vsyncpa [#allocation7], 1 }

</bundles_post_ra>
